<compile_context>
chip_gen: v5e
topology: v5e:2x2
jax: 0.10.0
libtpu: 0.0.40
codegen_flags: <defaults>
</compile_context>

<pallas_src>
import functools

import jax
import jax.numpy as jnp
from jax import lax
from jax.experimental import pallas as pl
from jax.experimental.pallas import tpu as pltpu

EPS = 1e-5  # PyTorch BatchNorm1d default eps


# ---------------------------------------------------------------------------
# Kernel 1: stats(x)  ->  bn_0 / ReLU / fc_0  ->  stats(net)
# ---------------------------------------------------------------------------
def _stats_fc0_kernel(
    x_ref,                      # (C, Tt)  current x tile (batch dim squeezed)
    g0_ref, b0_ref,             # (C, 1)   conditional gamma/beta for this batch elem
    w0_ref, bias0_ref,          # (C, C), (C, 1)  fc_0 weight / bias
    net_ref,                    # (C, Tt)  output: fc_0(relu(bn_0(x, c)))
    mean1_ref, rstd1_ref,       # (C, 1)   outputs: per-channel stats of `net`
    sum0, sq0, sum1, sq1,       # (C, 1)   scratch accumulators
    m0, r0,                     # (C, 1)   scratch: finalized mean / rstd of x
    *, inv_n,
):
    p = pl.program_id(0)
    b = pl.program_id(1)
    t = pl.program_id(2)
    is_first = jnp.logical_and(b == 0, t == 0)
    is_last = jnp.logical_and(b == pl.num_programs(1) - 1,
                              t == pl.num_programs(2) - 1)

    x = x_ref[...]  # (C, Tt) f32

    # ---- phase 0: accumulate per-channel stats of x -----------------------
    @pl.when(jnp.logical_and(p == 0, is_first))
    def _init_acc():
        zeros = jnp.zeros_like(sum0)
        sum0[...] = zeros
        sq0[...] = zeros
        sum1[...] = zeros
        sq1[...] = zeros

    @pl.when(p == 0)
    def _accum_x():
        sum0[...] += jnp.sum(x, axis=1, keepdims=True)
        sq0[...] += jnp.sum(x * x, axis=1, keepdims=True)

    @pl.when(jnp.logical_and(p == 0, is_last))
    def _finalize_x_stats():
        mean = sum0[...] * inv_n
        var = sq0[...] * inv_n - mean * mean   # biased, training-mode variance
        m0[...] = mean
        r0[...] = lax.rsqrt(var + EPS)

    # ---- phase 1: bn_0 -> ReLU -> fc_0, accumulate stats of `net` ---------
    @pl.when(p == 1)
    def _apply_bn0_fc0():
        h = (x - m0[...]) * r0[...]            # BatchNorm1d(affine=False)
        h = g0_ref[...] * h + b0_ref[...]      # conditional affine (per batch elem)
        h = jnp.maximum(h, 0.0)                # ReLU
        net = jnp.dot(w0_ref[...], h,          # 1x1 conv == (C,C) @ (C,Tt) on MXU
                      preferred_element_type=jnp.float32)
        net = net + bias0_ref[...]
        net_ref[...] = net.astype(net_ref.dtype)
        sum1[...] += jnp.sum(net, axis=1, keepdims=True)
        sq1[...] += jnp.sum(net * net, axis=1, keepdims=True)

    @pl.when(jnp.logical_and(p == 1, is_last))
    def _finalize_net_stats():
        mean = sum1[...] * inv_n
        var = sq1[...] * inv_n - mean * mean
        mean1_ref[...] = mean
        rstd1_ref[...] = lax.rsqrt(var + EPS)


# ---------------------------------------------------------------------------
# Kernel 2: bn_1 / ReLU / fc_1 + residual   (fully parallel over tiles)
# ---------------------------------------------------------------------------
def _fc1_residual_kernel(
    x_ref, net_ref,             # (C, Tt)
    mean1_ref, rstd1_ref,       # (C, 1)
    g1_ref, b1_ref,             # (C, 1)
    w1_ref, bias1_ref,          # (C, C), (C, 1)
    out_ref,                    # (C, Tt)
):
    h = (net_ref[...] - mean1_ref[...]) * rstd1_ref[...]
    h = g1_ref[...] * h + b1_ref[...]
    h = jnp.maximum(h, 0.0)
    dx = jnp.dot(w1_ref[...], h,
                 preferred_element_type=jnp.float32) + bias1_ref[...]
    out_ref[...] = (x_ref[...] + dx).astype(out_ref.dtype)


# ---------------------------------------------------------------------------
# Wrapper
# ---------------------------------------------------------------------------
def _choose_tile_t(T, C, itemsize, budget_bytes=24 * 2**20):
    """Largest lane tile (multiple of 128, dividing T exactly) such that the
    ~6 double-buffered (C, Tt) activation blocks live at once fit a VMEM
    budget that is safe on v5e/v6e (128 MiB) *and* v7x (64 MiB physical)."""
    if T % 128 != 0:
        return T                              # full-extent lane axis (allowed)
    cap = max(128, (budget_bytes // (6 * C * itemsize)) // 128 * 128)
    tt = min(T, cap)
    while T % tt != 0:                        # exact tiling: BN sums see no padding
        tt -= 128
    return tt


def cresnet_block_conv1d(x, c, params, *, tile_t=None):
    """Pallas forward of CResnetBlockConv1d.

    x: (B, C, T) float32 (PyTorch NCL layout, kept as-is — no transposes)
    c: (B, K) conditioning code
    params: PyTorch-layout weights; Conv1d weights with the size-1 kernel dim
            already squeezed, i.e. shape (out, in).
    """
    B, C, T = x.shape
    f32 = jnp.float32
    x = x.astype(f32)
    c = c.astype(f32)

    # Hoisted conditional affine params: gamma/beta depend only on c, so they
    # are computed once here (tiny (B,K)@(K,C) matmuls) instead of per tile.
    def affine(w, b):   # Conv1d(K -> C, kernel 1) applied to c
        w = jnp.asarray(w, f32)               # (C, K)
        b = jnp.asarray(b, f32)               # (C,)
        return (c @ w.T + b)[:, :, None]      # (B, C, 1): lane-broadcast ready

    g0 = affine(params["wg0"], params["bg0"])
    b0 = affine(params["wb0"], params["bb0"])
    g1 = affine(params["wg1"], params["bg1"])
    b1 = affine(params["wb1"], params["bb1"])

    w0 = jnp.asarray(params["wfc0"], f32)                 # (C, C)  (out, in)
    w1 = jnp.asarray(params["wfc1"], f32)
    bias0 = jnp.asarray(params["bfc0"], f32).reshape(C, 1)
    bias1 = jnp.asarray(params["bfc1"], f32).reshape(C, 1)

    itemsize = jnp.dtype(f32).itemsize
    tt = _choose_tile_t(T, C, itemsize) if tile_t is None else int(tile_t)
    if tt != T and tt % 128 != 0:
        tt = T                                # keep the lane axis Mosaic-legal
    if T % tt != 0:
        tt = T
    nt = T // tt

    # TODO(synk): pass bf16 activations (x / net over HBM) for ~2x bandwidth;
    # kept f32 here so the forward matches PyTorch f32 semantics exactly.

    # VMEM limit: ~8 live activation blocks (double-buffered ins/outs) + slack,
    # capped well under v7x's 64 MiB physical VMEM.
    vmem_limit = int(min(48 * 2**20,
                         max(16 * 2**20, 8 * C * tt * itemsize + 2 * 2**20)))

    # --------------- call 1: stats(x) -> bn_0/relu/fc_0 -> stats(net) ------
    bs_x1 = pl.BlockSpec((None, C, tt), lambda p, b, t: (b, 0, t))
    bs_cvec1 = pl.BlockSpec((None, C, 1), lambda p, b, t: (b, 0, 0))
    bs_w1 = pl.BlockSpec((C, C), lambda p, b, t: (0, 0))
    bs_bias1 = pl.BlockSpec((C, 1), lambda p, b, t: (0, 0))
    # `net` is only written in phase 1; during phase 0 pin its block index to
    # (0,0,0) so nothing is flushed to HBM until real data has been produced.
    bs_net = pl.BlockSpec((None, C, tt), lambda p, b, t: (b * p, 0, t * p))
    bs_stat = pl.BlockSpec((C, 1), lambda p, b, t: (0, 0))

    net, mean1, rstd1 = pl.pallas_call(
        functools.partial(_stats_fc0_kernel, inv_n=1.0 / float(B * T)),
        grid=(2, B, nt),
        in_specs=[bs_x1, bs_cvec1, bs_cvec1, bs_w1, bs_bias1],
        out_specs=(bs_net, bs_stat, bs_stat),
        out_shape=(
            jax.ShapeDtypeStruct((B, C, T), f32),
            jax.ShapeDtypeStruct((C, 1), f32),
            jax.ShapeDtypeStruct((C, 1), f32),
        ),
        scratch_shapes=[pltpu.VMEM((C, 1), f32) for _ in range(6)],
        compiler_params=pltpu.CompilerParams(
            dimension_semantics=("arbitrary", "arbitrary", "arbitrary"),
            vmem_limit_bytes=vmem_limit,
        ),
    )(x, g0, b0, w0, bias0)

    # --------------- call 2: bn_1/relu/fc_1 + residual (parallel) ----------
    bs_x2 = pl.BlockSpec((None, C, tt), lambda b, t: (b, 0, t))
    bs_cvec2 = pl.BlockSpec((None, C, 1), lambda b, t: (b, 0, 0))
    bs_stat2 = pl.BlockSpec((C, 1), lambda b, t: (0, 0))
    bs_w2 = pl.BlockSpec((C, C), lambda b, t: (0, 0))
    bs_bias2 = pl.BlockSpec((C, 1), lambda b, t: (0, 0))

    out = pl.pallas_call(
        _fc1_residual_kernel,
        grid=(B, nt),
        in_specs=[bs_x2, bs_x2, bs_stat2, bs_stat2, bs_cvec2, bs_cvec2,
                  bs_w2, bs_bias2],
        out_specs=bs_x2,
        out_shape=jax.ShapeDtypeStruct((B, C, T), f32),
        compiler_params=pltpu.CompilerParams(
            dimension_semantics=("parallel", "parallel"),
            vmem_limit_bytes=vmem_limit,
        ),
    )(x, net, mean1, rstd1, g1, b1, w1, bias1)
    return out


# ---------------------------------------------------------------------------
# Pure-JAX replica of the PyTorch forward (NCL layout) for validation.
# ---------------------------------------------------------------------------
def reference(x, c, p):
    def cbn(h, wg, bg, wb, bb):
        gamma = c @ wg.T + bg                                  # (B, C)
        beta = c @ wb.T + bb
        mean = h.mean(axis=(0, 2), keepdims=True)
        var = ((h - mean) ** 2).mean(axis=(0, 2), keepdims=True)
        hn = (h - mean) / jnp.sqrt(var + EPS)
        return gamma[:, :, None] * hn + beta[:, :, None]

    def conv(h, w, b):
        return jnp.einsum("oi,bit->bot", w, h) + b[None, :, None]

    net = conv(jax.nn.relu(cbn(x, p["wg0"], p["bg0"], p["wb0"], p["bb0"])),
               p["wfc0"], p["bfc0"])
    dx = conv(jax.nn.relu(cbn(net, p["wg1"], p["bg1"], p["wb1"], p["bb1"])),
              p["wfc1"], p["bfc1"])
    return x + dx


if __name__ == "__main__":
    B, K, C, T = 2, 8, 32, 512   # batch, code_dim, size (features), num points

    key = jax.random.PRNGKey(0)
    ks = jax.random.split(key, 16)
    x = jax.random.normal(ks[0], (B, C, T), jnp.float32)
    c = jax.random.normal(ks[1], (B, K), jnp.float32)

    def rnd(k, shape, scale=0.1):
        return scale * jax.random.normal(k, shape, jnp.float32)

    # Deterministic synthetic parameters (shapes from __init__; non-trivial
    # values so every branch of the forward pass is exercised).
    params = {
        "wg0": rnd(ks[2], (C, K)), "bg0": 1.0 + rnd(ks[3], (C,)),
        "wb0": rnd(ks[4], (C, K)), "bb0": rnd(ks[5], (C,)),
        "wg1": rnd(ks[6], (C, K)), "bg1": 1.0 + rnd(ks[7], (C,)),
        "wb1": rnd(ks[8], (C, K)), "bb1": rnd(ks[9], (C,)),
        "wfc0": rnd(ks[10], (C, C)), "bfc0": rnd(ks[11], (C,)),
        "wfc1": rnd(ks[12], (C, C)), "bfc1": rnd(ks[13], (C,)),
    }

    # tile_t=128 forces a 4-tile grid per batch element so the cross-tile
    # BN-statistics accumulation path is exercised even at this small T.
    out = jax.block_until_ready(cresnet_block_conv1d(x, c, params, tile_t=128))
    ref = jax.block_until_ready(reference(x, c, params))

    assert out.shape == (B, C, T)
    max_err = float(jnp.max(jnp.abs(out - ref)))
    assert jnp.allclose(out, ref, atol=1e-3, rtol=1e-3), f"mismatch: {max_err}"
    print("KERNEL_OK")
</pallas_src>

<mosaic_0001>
module attributes {stable_mosaic.version = 11 : i64} {
  func.func @_stats_fc0_kernel(%arg0: i32, %arg1: i32, %arg2: i32, %arg3: memref<1x32x128xf32, #tpu.memory_space<vmem>>, %arg4: memref<1x32x1xf32, #tpu.memory_space<vmem>>, %arg5: memref<1x32x1xf32, #tpu.memory_space<vmem>>, %arg6: memref<32x32xf32, #tpu.memory_space<vmem>>, %arg7: memref<32x1xf32, #tpu.memory_space<vmem>>, %arg8: memref<1x32x128xf32, #tpu.memory_space<vmem>>, %arg9: memref<32x1xf32, #tpu.memory_space<vmem>>, %arg10: memref<32x1xf32, #tpu.memory_space<vmem>>, %arg11: memref<32x1xf32, #tpu.memory_space<vmem>>, %arg12: memref<32x1xf32, #tpu.memory_space<vmem>>, %arg13: memref<32x1xf32, #tpu.memory_space<vmem>>, %arg14: memref<32x1xf32, #tpu.memory_space<vmem>>, %arg15: memref<32x1xf32, #tpu.memory_space<vmem>>, %arg16: memref<32x1xf32, #tpu.memory_space<vmem>>) attributes {dimension_semantics = [#tpu.dimension_semantics<arbitrary>, #tpu.dimension_semantics<arbitrary>, #tpu.dimension_semantics<arbitrary>], iteration_bounds = array<i64: 2, 2, 4>, scalar_prefetch = 0 : i64, scratch_operands = 6 : i64, tpu.core_type = #tpu.core_type<tc>, window_params = [{transform_indices = @transform_0, window_bounds = array<i64: 1, 32, 128>}, {transform_indices = @transform_1, window_bounds = array<i64: 1, 32, 1>}, {transform_indices = @transform_2, window_bounds = array<i64: 1, 32, 1>}, {pipeline_mode = #tpu.pipeline_mode<synchronous>, transform_indices = @transform_3, window_bounds = array<i64: 32, 32>}, {pipeline_mode = #tpu.pipeline_mode<synchronous>, transform_indices = @transform_4, window_bounds = array<i64: 32, 1>}, {transform_indices = @transform_5, window_bounds = array<i64: 1, 32, 128>}, {pipeline_mode = #tpu.pipeline_mode<synchronous>, transform_indices = @transform_6, window_bounds = array<i64: 32, 1>}, {pipeline_mode = #tpu.pipeline_mode<synchronous>, transform_indices = @transform_7, window_bounds = array<i64: 32, 1>}]} {
    %c0_i32 = arith.constant 0 : i32
    %0 = arith.cmpi eq, %arg1, %c0_i32 : i32
    %c0_i32_0 = arith.constant 0 : i32
    %1 = arith.cmpi eq, %arg2, %c0_i32_0 : i32
    %2 = arith.andi %0, %1 : i1
    %c1_i32 = arith.constant 1 : i32
    %3 = arith.cmpi eq, %arg1, %c1_i32 : i32
    %c3_i32 = arith.constant 3 : i32
    %4 = arith.cmpi eq, %arg2, %c3_i32 : i32
    %5 = arith.andi %3, %4 : i1
    %c0 = arith.constant 0 : index
    %c0_1 = arith.constant 0 : index
    %c0_2 = arith.constant 0 : index
    %6 = vector.load %arg3[%c0, %c0_1, %c0_2] : memref<1x32x128xf32, #tpu.memory_space<vmem>>, vector<1x32x128xf32>
    %7 = vector.shape_cast %6 : vector<1x32x128xf32> to vector<32x128xf32>
    %c0_i32_3 = arith.constant 0 : i32
    %8 = arith.cmpi eq, %arg0, %c0_i32_3 : i32
    %9 = arith.andi %8, %2 : i1
    %10 = arith.extui %9 : i1 to i32
    %c0_i32_4 = arith.constant 0 : i32
    %11 = arith.cmpi ne, %10, %c0_i32_4 : i32
    scf.if %11 {
      %cst = arith.constant 0.000000e+00 : f32
      %26 = vector.broadcast %cst : f32 to vector<32x1xf32>
      %c0_13 = arith.constant 0 : index
      %c0_14 = arith.constant 0 : index
      %27 = vector.load %arg11[%c0_13, %c0_14] : memref<32x1xf32, #tpu.memory_space<vmem>>, vector<32x1xf32>
      tpu.vector_store %arg11[%c0_13, %c0_14], %26 {strides = array<i32>} : memref<32x1xf32, #tpu.memory_space<vmem>>, vector<32x1xf32>,
      %c0_15 = arith.constant 0 : index
      %c0_16 = arith.constant 0 : index
      %28 = vector.load %arg12[%c0_15, %c0_16] : memref<32x1xf32, #tpu.memory_space<vmem>>, vector<32x1xf32>
      tpu.vector_store %arg12[%c0_15, %c0_16], %26 {strides = array<i32>} : memref<32x1xf32, #tpu.memory_space<vmem>>, vector<32x1xf32>,
      %c0_17 = arith.constant 0 : index
      %c0_18 = arith.constant 0 : index
      %29 = vector.load %arg13[%c0_17, %c0_18] : memref<32x1xf32, #tpu.memory_space<vmem>>, vector<32x1xf32>
      tpu.vector_store %arg13[%c0_17, %c0_18], %26 {strides = array<i32>} : memref<32x1xf32, #tpu.memory_space<vmem>>, vector<32x1xf32>,
      %c0_19 = arith.constant 0 : index
      %c0_20 = arith.constant 0 : index
      %30 = vector.load %arg14[%c0_19, %c0_20] : memref<32x1xf32, #tpu.memory_space<vmem>>, vector<32x1xf32>
      tpu.vector_store %arg14[%c0_19, %c0_20], %26 {strides = array<i32>} : memref<32x1xf32, #tpu.memory_space<vmem>>, vector<32x1xf32>,
    } else {
    }
    %c0_i32_5 = arith.constant 0 : i32
    %12 = arith.cmpi eq, %arg0, %c0_i32_5 : i32
    %13 = arith.extui %12 : i1 to i32
    %c0_i32_6 = arith.constant 0 : i32
    %14 = arith.cmpi ne, %13, %c0_i32_6 : i32
    scf.if %14 {
      %c0_13 = arith.constant 0 : index
      %c0_14 = arith.constant 0 : index
      %26 = vector.load %arg11[%c0_13, %c0_14] : memref<32x1xf32, #tpu.memory_space<vmem>>, vector<32x1xf32>
      %cst = arith.constant dense<0.000000e+00> : vector<32xf32>
      %27 = vector.multi_reduction <add>, %7, %cst [1] : vector<32x128xf32> to vector<32xf32>
      %28 = vector.shape_cast %27 : vector<32xf32> to vector<32x1xf32>
      %29 = arith.addf %26, %28 : vector<32x1xf32>
      %c0_15 = arith.constant 0 : index
      %c0_16 = arith.constant 0 : index
      %30 = vector.load %arg11[%c0_15, %c0_16] : memref<32x1xf32, #tpu.memory_space<vmem>>, vector<32x1xf32>
      tpu.vector_store %arg11[%c0_15, %c0_16], %29 {strides = array<i32>} : memref<32x1xf32, #tpu.memory_space<vmem>>, vector<32x1xf32>,
      %c0_17 = arith.constant 0 : index
      %c0_18 = arith.constant 0 : index
      %31 = vector.load %arg12[%c0_17, %c0_18] : memref<32x1xf32, #tpu.memory_space<vmem>>, vector<32x1xf32>
      %32 = arith.mulf %7, %7 : vector<32x128xf32>
      %cst_19 = arith.constant dense<0.000000e+00> : vector<32xf32>
      %33 = vector.multi_reduction <add>, %32, %cst_19 [1] : vector<32x128xf32> to vector<32xf32>
      %34 = vector.shape_cast %33 : vector<32xf32> to vector<32x1xf32>
      %35 = arith.addf %31, %34 : vector<32x1xf32>
      %c0_20 = arith.constant 0 : index
      %c0_21 = arith.constant 0 : index
      %36 = vector.load %arg12[%c0_20, %c0_21] : memref<32x1xf32, #tpu.memory_space<vmem>>, vector<32x1xf32>
      tpu.vector_store %arg12[%c0_20, %c0_21], %35 {strides = array<i32>} : memref<32x1xf32, #tpu.memory_space<vmem>>, vector<32x1xf32>,
    } else {
    }
    %c0_i32_7 = arith.constant 0 : i32
    %15 = arith.cmpi eq, %arg0, %c0_i32_7 : i32
    %16 = arith.andi %15, %5 : i1
    %17 = arith.extui %16 : i1 to i32
    %c0_i32_8 = arith.constant 0 : i32
    %18 = arith.cmpi ne, %17, %c0_i32_8 : i32
    scf.if %18 {
      %c0_13 = arith.constant 0 : index
      %c0_14 = arith.constant 0 : index
      %26 = vector.load %arg11[%c0_13, %c0_14] : memref<32x1xf32, #tpu.memory_space<vmem>>, vector<32x1xf32>
      %cst = arith.constant 9.765625E-4 : f32
      %27 = vector.broadcast %cst : f32 to vector<32x1xf32>
      %28 = arith.mulf %26, %27 : vector<32x1xf32>
      %c0_15 = arith.constant 0 : index
      %c0_16 = arith.constant 0 : index
      %29 = vector.load %arg12[%c0_15, %c0_16] : memref<32x1xf32, #tpu.memory_space<vmem>>, vector<32x1xf32>
      %cst_17 = arith.constant 9.765625E-4 : f32
      %30 = vector.broadcast %cst_17 : f32 to vector<32x1xf32>
      %31 = arith.mulf %29, %30 : vector<32x1xf32>
      %32 = arith.mulf %28, %28 : vector<32x1xf32>
      %33 = arith.subf %31, %32 : vector<32x1xf32>
      %c0_18 = arith.constant 0 : index
      %c0_19 = arith.constant 0 : index
      %34 = vector.load %arg15[%c0_18, %c0_19] : memref<32x1xf32, #tpu.memory_space<vmem>>, vector<32x1xf32>
      tpu.vector_store %arg15[%c0_18, %c0_19], %28 {strides = array<i32>} : memref<32x1xf32, #tpu.memory_space<vmem>>, vector<32x1xf32>,
      %cst_20 = arith.constant 9.99999974E-6 : f32
      %35 = vector.broadcast %cst_20 : f32 to vector<32x1xf32>
      %36 = arith.addf %33, %35 : vector<32x1xf32>
      %37 = math.rsqrt %36 : vector<32x1xf32>
      %c0_21 = arith.constant 0 : index
      %c0_22 = arith.constant 0 : index
      %38 = vector.load %arg16[%c0_21, %c0_22] : memref<32x1xf32, #tpu.memory_space<vmem>>, vector<32x1xf32>
      tpu.vector_store %arg16[%c0_21, %c0_22], %37 {strides = array<i32>} : memref<32x1xf32, #tpu.memory_space<vmem>>, vector<32x1xf32>,
    } else {
    }
    %c1_i32_9 = arith.constant 1 : i32
    %19 = arith.cmpi eq, %arg0, %c1_i32_9 : i32
    %20 = arith.extui %19 : i1 to i32
    %c0_i32_10 = arith.constant 0 : i32
    %21 = arith.cmpi ne, %20, %c0_i32_10 : i32
    scf.if %21 {
      %c0_13 = arith.constant 0 : index
      %c0_14 = arith.constant 0 : index
      %26 = vector.load %arg15[%c0_13, %c0_14] : memref<32x1xf32, #tpu.memory_space<vmem>>, vector<32x1xf32>
      %27 = vector.broadcast %26 : vector<32x1xf32> to vector<32x128xf32>
      %28 = arith.subf %7, %27 : vector<32x128xf32>
      %c0_15 = arith.constant 0 : index
      %c0_16 = arith.constant 0 : index
      %29 = vector.load %arg16[%c0_15, %c0_16] : memref<32x1xf32, #tpu.memory_space<vmem>>, vector<32x1xf32>
      %30 = vector.broadcast %29 : vector<32x1xf32> to vector<32x128xf32>
      %31 = arith.mulf %28, %30 : vector<32x128xf32>
      %c0_17 = arith.constant 0 : index
      %c0_18 = arith.constant 0 : index
      %c0_19 = arith.constant 0 : index
      %32 = vector.load %arg4[%c0_17, %c0_18, %c0_19] : memref<1x32x1xf32, #tpu.memory_space<vmem>>, vector<1x32x1xf32>
      %33 = vector.shape_cast %32 : vector<1x32x1xf32> to vector<32x1xf32>
      %34 = vector.broadcast %33 : vector<32x1xf32> to vector<32x128xf32>
      %35 = arith.mulf %34, %31 : vector<32x128xf32>
      %c0_20 = arith.constant 0 : index
      %c0_21 = arith.constant 0 : index
      %c0_22 = arith.constant 0 : index
      %36 = vector.load %arg5[%c0_20, %c0_21, %c0_22] : memref<1x32x1xf32, #tpu.memory_space<vmem>>, vector<1x32x1xf32>
      %37 = vector.shape_cast %36 : vector<1x32x1xf32> to vector<32x1xf32>
      %38 = vector.broadcast %37 : vector<32x1xf32> to vector<32x128xf32>
      %39 = arith.addf %35, %38 : vector<32x128xf32>
      %cst = arith.constant 0.000000e+00 : f32
      %40 = vector.broadcast %cst : f32 to vector<32x128xf32>
      %41 = arith.maximumf %39, %40 : vector<32x128xf32>
      %c0_23 = arith.constant 0 : index
      %c0_24 = arith.constant 0 : index
      %42 = vector.load %arg6[%c0_23, %c0_24] : memref<32x32xf32, #tpu.memory_space<vmem>>, vector<32x32xf32>
      %cst_25 = arith.constant dense<0.000000e+00> : vector<32x128xf32>
      %43 = tpu.matmul %42, %41, %cst_25 {dimension_numbers = #tpu.dot_dimension_numbers<[1], [0], [0], [1], [0, 0, 1, 1], [], []>} : vector<32x32xf32>, vector<32x128xf32>, vector<32x128xf32> -> vector<32x128xf32>
      %c0_26 = arith.constant 0 : index
      %c0_27 = arith.constant 0 : index
      %44 = vector.load %arg7[%c0_26, %c0_27] : memref<32x1xf32, #tpu.memory_space<vmem>>, vector<32x1xf32>
      %45 = vector.broadcast %44 : vector<32x1xf32> to vector<32x128xf32>
      %46 = arith.addf %43, %45 : vector<32x128xf32>
      %c0_28 = arith.constant 0 : index
      %c0_29 = arith.constant 0 : index
      %c0_30 = arith.constant 0 : index
      %47 = vector.load %arg8[%c0_28, %c0_29, %c0_30] : memref<1x32x128xf32, #tpu.memory_space<vmem>>, vector<1x32x128xf32>
      %48 = vector.shape_cast %47 : vector<1x32x128xf32> to vector<32x128xf32>
      %49 = vector.shape_cast %46 : vector<32x128xf32> to vector<1x32x128xf32>
      tpu.vector_store %arg8[%c0_28, %c0_29, %c0_30], %49 {strides = array<i32>} : memref<1x32x128xf32, #tpu.memory_space<vmem>>, vector<1x32x128xf32>,
      %c0_31 = arith.constant 0 : index
      %c0_32 = arith.constant 0 : index
      %50 = vector.load %arg13[%c0_31, %c0_32] : memref<32x1xf32, #tpu.memory_space<vmem>>, vector<32x1xf32>
      %cst_33 = arith.constant dense<0.000000e+00> : vector<32xf32>
      %51 = vector.multi_reduction <add>, %46, %cst_33 [1] : vector<32x128xf32> to vector<32xf32>
      %52 = vector.shape_cast %51 : vector<32xf32> to vector<32x1xf32>
      %53 = arith.addf %50, %52 : vector<32x1xf32>
      %c0_34 = arith.constant 0 : index
      %c0_35 = arith.constant 0 : index
      %54 = vector.load %arg13[%c0_34, %c0_35] : memref<32x1xf32, #tpu.memory_space<vmem>>, vector<32x1xf32>
      tpu.vector_store %arg13[%c0_34, %c0_35], %53 {strides = array<i32>} : memref<32x1xf32, #tpu.memory_space<vmem>>, vector<32x1xf32>,
      %c0_36 = arith.constant 0 : index
      %c0_37 = arith.constant 0 : index
      %55 = vector.load %arg14[%c0_36, %c0_37] : memref<32x1xf32, #tpu.memory_space<vmem>>, vector<32x1xf32>
      %56 = arith.mulf %46, %46 : vector<32x128xf32>
      %cst_38 = arith.constant dense<0.000000e+00> : vector<32xf32>
      %57 = vector.multi_reduction <add>, %56, %cst_38 [1] : vector<32x128xf32> to vector<32xf32>
      %58 = vector.shape_cast %57 : vector<32xf32> to vector<32x1xf32>
      %59 = arith.addf %55, %58 : vector<32x1xf32>
      %c0_39 = arith.constant 0 : index
      %c0_40 = arith.constant 0 : index
      %60 = vector.load %arg14[%c0_39, %c0_40] : memref<32x1xf32, #tpu.memory_space<vmem>>, vector<32x1xf32>
      tpu.vector_store %arg14[%c0_39, %c0_40], %59 {strides = array<i32>} : memref<32x1xf32, #tpu.memory_space<vmem>>, vector<32x1xf32>,
    } else {
    }
    %c1_i32_11 = arith.constant 1 : i32
    %22 = arith.cmpi eq, %arg0, %c1_i32_11 : i32
    %23 = arith.andi %22, %5 : i1
    %24 = arith.extui %23 : i1 to i32
    %c0_i32_12 = arith.constant 0 : i32
    %25 = arith.cmpi ne, %24, %c0_i32_12 : i32
    scf.if %25 {
      %c0_13 = arith.constant 0 : index
      %c0_14 = arith.constant 0 : index
      %26 = vector.load %arg13[%c0_13, %c0_14] : memref<32x1xf32, #tpu.memory_space<vmem>>, vector<32x1xf32>
      %cst = arith.constant 9.765625E-4 : f32
      %27 = vector.broadcast %cst : f32 to vector<32x1xf32>
      %28 = arith.mulf %26, %27 : vector<32x1xf32>
      %c0_15 = arith.constant 0 : index
      %c0_16 = arith.constant 0 : index
      %29 = vector.load %arg14[%c0_15, %c0_16] : memref<32x1xf32, #tpu.memory_space<vmem>>, vector<32x1xf32>
      %cst_17 = arith.constant 9.765625E-4 : f32
      %30 = vector.broadcast %cst_17 : f32 to vector<32x1xf32>
      %31 = arith.mulf %29, %30 : vector<32x1xf32>
      %32 = arith.mulf %28, %28 : vector<32x1xf32>
      %33 = arith.subf %31, %32 : vector<32x1xf32>
      %c0_18 = arith.constant 0 : index
      %c0_19 = arith.constant 0 : index
      %34 = vector.load %arg9[%c0_18, %c0_19] : memref<32x1xf32, #tpu.memory_space<vmem>>, vector<32x1xf32>
      tpu.vector_store %arg9[%c0_18, %c0_19], %28 {strides = array<i32>} : memref<32x1xf32, #tpu.memory_space<vmem>>, vector<32x1xf32>,
      %cst_20 = arith.constant 9.99999974E-6 : f32
      %35 = vector.broadcast %cst_20 : f32 to vector<32x1xf32>
      %36 = arith.addf %33, %35 : vector<32x1xf32>
      %37 = math.rsqrt %36 : vector<32x1xf32>
      %c0_21 = arith.constant 0 : index
      %c0_22 = arith.constant 0 : index
      %38 = vector.load %arg10[%c0_21, %c0_22] : memref<32x1xf32, #tpu.memory_space<vmem>>, vector<32x1xf32>
      tpu.vector_store %arg10[%c0_21, %c0_22], %37 {strides = array<i32>} : memref<32x1xf32, #tpu.memory_space<vmem>>, vector<32x1xf32>,
    } else {
    }
    return
  }
  func.func @transform_0(%arg0: i32, %arg1: i32, %arg2: i32) -> (i32, i32, i32) {
    %c0_i32 = arith.constant 0 : i32
    %c0_i32_0 = arith.constant 0 : i32
    return %arg1, %c0_i32, %arg2 : i32, i32, i32
  }
  func.func @transform_1(%arg0: i32, %arg1: i32, %arg2: i32) -> (i32, i32, i32) {
    %c0_i32 = arith.constant 0 : i32
    %c0_i32_0 = arith.constant 0 : i32
    %c0_i32_1 = arith.constant 0 : i32
    return %arg1, %c0_i32, %c0_i32_0 : i32, i32, i32
  }
  func.func @transform_2(%arg0: i32, %arg1: i32, %arg2: i32) -> (i32, i32, i32) {
    %c0_i32 = arith.constant 0 : i32
    %c0_i32_0 = arith.constant 0 : i32
    %c0_i32_1 = arith.constant 0 : i32
    return %arg1, %c0_i32, %c0_i32_0 : i32, i32, i32
  }
  func.func @transform_3(%arg0: i32, %arg1: i32, %arg2: i32) -> (i32, i32) {
    %c0_i32 = arith.constant 0 : i32
    %c0_i32_0 = arith.constant 0 : i32
    %c0_i32_1 = arith.constant 0 : i32
    return %c0_i32, %c0_i32_0 : i32, i32
  }
  func.func @transform_4(%arg0: i32, %arg1: i32, %arg2: i32) -> (i32, i32) {
    %c0_i32 = arith.constant 0 : i32
    %c0_i32_0 = arith.constant 0 : i32
    %c0_i32_1 = arith.constant 0 : i32
    return %c0_i32, %c0_i32_0 : i32, i32
  }
  func.func @transform_5(%arg0: i32, %arg1: i32, %arg2: i32) -> (i32, i32, i32) {
    %0 = arith.muli %arg1, %arg0 : i32
    %1 = arith.muli %arg2, %arg0 : i32
    %c0_i32 = arith.constant 0 : i32
    %c0_i32_0 = arith.constant 0 : i32
    return %0, %c0_i32, %1 : i32, i32, i32
  }
  func.func @transform_6(%arg0: i32, %arg1: i32, %arg2: i32) -> (i32, i32) {
    %c0_i32 = arith.constant 0 : i32
    %c0_i32_0 = arith.constant 0 : i32
    %c0_i32_1 = arith.constant 0 : i32
    return %c0_i32, %c0_i32_0 : i32, i32
  }
  func.func @transform_7(%arg0: i32, %arg1: i32, %arg2: i32) -> (i32, i32) {
    %c0_i32 = arith.constant 0 : i32
    %c0_i32_0 = arith.constant 0 : i32
    %c0_i32_1 = arith.constant 0 : i32
    return %c0_i32, %c0_i32_0 : i32, i32
  }
}

</mosaic_0001>

<bundles_post_ra>
// kernel: tpu_custom_call.1
= control target key start
LH: loop header
LB: loop body
LE: loop exit
PB: predicated region body
PF: predicated region fallthrough
CT: control target
= control target key end

     0   :  { %s1793_s0 = inlined_call_operand.hbm [shape: f32[2,32,512], index: 0, kind: input, shape index: {}]   ;;  %s1794_s1 = inlined_call_operand.vmem [shape: f32[2,32,1], index: 1, kind: input, shape index: {}]   ;;  %s1795_s2 = inlined_call_operand.vmem [shape: f32[2,32,1], index: 2, kind: input, shape index: {}]   ;;  %s1796_s3 = inlined_call_operand.vmem [shape: f32[32,32], index: 3, kind: input, shape index: {}]   ;;  %s1797_s4 = inlined_call_operand.vmem [shape: f32[32,1], index: 4, kind: input, shape index: {}]   ;;  %s1798_s5 = inlined_call_operand.hbm [shape: f32[2,32,512], index: 5, kind: output, shape index: {0}]   ;;  %s1799_s6 = inlined_call_operand.vmem [shape: f32[32,1], index: 6, kind: output, shape index: {1}]   ;;  %s1800_s7 = inlined_call_operand.vmem [shape: f32[32,1], index: 7, kind: output, shape index: {2}]  }
   0x1   :  { %1813 = sst [smem:[#allocation22_spill]] %s1793_s0 }
   0x2   :  { %1814 = sst [smem:[#allocation23_spill]] %s1794_s1 }
   0x3   :  { %1815 = sst [smem:[#allocation24_spill]] %s1795_s2 }
   0x4   :  { %1816 = sst [smem:[#allocation25_spill]] %s1796_s3 }
   0x5   :  { %1817 = sst [smem:[#allocation26_spill]] %s1797_s4 }
   0x6   :  { %1818 = sst [smem:[#allocation27_spill]] %s1798_s5 }
   0x7   :  { %1819 = sst [smem:[#allocation28_spill]] %s1799_s6 }
   0x8   :  { %1820 = sst [smem:[#allocation29_spill]] %s1800_s7 }
   0x9   :  { %13 = vsyncpa [#allocation9], 0 }
   0xa   :  { %15 = vsyncpa [#allocation9 + $0x1], 0 }
   0xb   :  { %16 = vsyncpa [#allocation10], 0 }
   0xc   :  { %18 = vsyncpa [#allocation10 + $0x1], 0  ;;  %s1398_s24 = smov 0   ;;  %s1400_s25 = smov 0  }
   0xd   :  { %s1402_s26 = smov 0   ;;  %s1404_s27 = smov 0  }
   0xe   :  { %s1406_s28 = smov 0   ;;  %s1408_s29 = smov 0  }
   0xf   :  { %s1410_s30 = smov 0   ;;  %s1412_s8 = smov 0  }
  0x10   :  { %s1414_s9 = smov 0   ;;  %s1416_s10 = smov 0  }
  0x11   :  { %s1418_s11 = smov 0   ;;  %s1420_s12 = smov 0  }
  0x12   :  { %s1422_s13 = smov 0  }
  0x13 LB: > { %1821 = sst [smem:[#allocation14_spill]] %s1320_s29  ;;  %s1801_s14 = sadd.s32 4294967295, %s1348_s13   ;;  %s1348_s13 = sphi %s1422_s13, %s24_s13   ;;  %s1344_s12 = sphi %s1420_s12, %s1855_s12   ;;  %s1340_s11 = sphi %s1418_s11, %s1854_s11   ;;  %s1336_s10 = sphi %s1416_s10, %s1862_s10   ;;  %s1332_s9 = sphi %s1414_s9, %s1852_s9   ;;  %s1328_s8 = sphi %s1412_s8, %s1851_s8   ;;  %s1324_s30 = sphi %s1410_s30, %s1861_s30   ;;  %s1320_s29 = sphi %s1408_s29, %s1850_s29   ;;  %s1316_s28 = sphi %s1406_s28, %s1860_s28   ;;  %s1312_s27 = sphi %s1404_s27, %s1859_s27   ;;  %s1308_s26 = sphi %s1402_s26, %s1858_s26   ;;  %s1304_s25 = sphi %s1400_s25, %s1857_s25   ;;  %s1300_s24 = sphi %s1398_s24, %s1856_s24  }
  0x14   : > { %1822 = sst [smem:[#allocation15_spill]] %s1340_s11  ;;  %s36_s16 = sadd.s32 1, %s1336_s10 }
  0x15   : > { %1823 = sst [smem:[#allocation16_spill]] %s1344_s12  ;;  %s39_s17 = sadd.s32 1, %s1340_s11 }
  0x16   : > { %p37_p0 = scmp.ge.s32.totalorder %s36_s16, 4  ;;  %s43_s18 = sadd.s32 1, %s1344_s12 }
  0x17   : > { %s52_s19 = sadd.s32 1, %s1320_s29  ;;  %p59_p1 = scmp.ne.s32.totalorder %s1320_s29, %s1316_s28 }
  0x18   : > { %s1864_s16 = smov (%p37_p0, %s36_s16), 0  ;;  %s1866_s17 = smov (!%p37_p0, %s39_s17), %s1340_s11 }
  0x19   : > { %1824 = sst [smem:[#allocation17_spill]] %s1864_s16  ;;  %s48_s20 = ssub.s32 %s1336_s10, %s1864_s16 }
  0x1a   : > { %p60_p2 = scmp.eq.s32.totalorder %s1348_s13, 0  ;;  %p41_p3 = scmp.ge.s32.totalorder %s1866_s17, 2 }
  0x1b   : > { %p65_p4 = scmp.ne.s32.totalorder %s1316_s28, %s1312_s27  ;;  %p66_p6 = scmp.eq.s32.totalorder %s1801_s14, 0 }
  0x1c   : > { %p1479_p5 = por %p60_p2, %p59_p1  ;;  %s1868_s17 = smov (%p41_p3, %s1866_s17), 0 }
  0x1d   : > { %1826 = sst [smem:[#allocation18_spill]] %s1868_s17  ;;  %s1870_s18 = smov (!%p41_p3, %s43_s18), %s1344_s12 }
  0x1e   : > { %s47_s22 = ssub.s32 %s1340_s11, %s1868_s17  ;;  %p1490_p7 = por %p66_p6, %p65_p4 }
  0x1f   : > { %p45_p8 = scmp.ge.s32.totalorder %s1870_s18, 2  ;;  %s49_s27 = sor.u32 %s48_s20, %s47_s22 }
  0x20   : > { %p50_p9 = scmp.eq.s32.totalorder %s49_s27, 0  ;;  %s169_s15 = smul.u32 %s1340_s11, %s1344_s12 }
  0x21   : > { %s1872_s18 = smov (%p45_p8, %s1870_s18), 0  ;;  %s170_s5 = smul.u32 %s1336_s10, %s1344_s12 }
  0x22   : > { %1828 = sst [smem:[#allocation19_spill]] %s1872_s18  ;;  %s178_s7 = sadd.s32 1, %s1308_s26 }
  0x23   : > { %s1499_s14 = scalar_select %p50_p9, %s1320_s29, %s52_s19  }
  0x24   : > { %s171_s6 = smul.u32 %s1872_s18, %s1868_s17  ;;  %p188_p10 = scmp.ne.s32.totalorder %s1308_s26, %s1304_s25 }
  0x25   : > { %1829 = sst [smem:[#allocation20_spill]] %s1499_s14  ;;  %s172_s3 = smul.u32 %s1872_s18, %s1864_s16 }
  0x26   : > { %s1830_s20 = sadd.s32 4294967295, %s1348_s13   ;;  %s173_s22 = ssub.s32 %s169_s15, %s171_s6 }
  0x27   : > { %p189_p11 = scmp.eq.s32.totalorder %s1830_s20, 15  ;;  %p194_p12 = scmp.ne.s32.totalorder %s1304_s25, %s1300_s24 }
  0x28   : > { %s174_s27 = ssub.s32 %s170_s5, %s172_s3  ;;  %s1832_s14 = sadd.s32 4294967294, %s1348_s13  }
  0x29   : > { %p1514_p13 = por %p189_p11, %p188_p10  ;;  %s175_s19 = sor.u32 %s174_s27, %s173_s22 }
  0x2a   : > { %p195_p0 = scmp.eq.s32.totalorder %s1832_s14, 15  ;;  %p176_p1 = scmp.eq.s32.totalorder %s175_s19, 0 }
  0x2b   : > { %p1047_p3 = scmp.lt.s32.totalorder %s1348_s13, 16  ;;  %s263_s6 = sand.u32 1, %s1320_s29  }
  0x2c   : > { %p1520_p2 = por %p195_p0, %p194_p12  ;;  %s1001_s15 = sshll.u32 %s1340_s11, 4 }
  0x2d   : > { %s1526_s18 = scalar_select %p176_p1, %s1308_s26, %s178_s7  }
  0x2e   : > { %s1000_s3 = sshll.u32 %s263_s6, 5  ;;  %s271_s5 = sadd.s32 %s1336_s10, %s1001_s15 }
  0x2f   : > { %1834 = sst [smem:[#allocation21_spill]] %s1526_s18  ;;  %s1002_s20 = sshll.u32 %s271_s5, 3 }
  0x30   : > { %s267_s16 = scalar_lea.vmem [#allocation8], %s1000_s3  ;;  %s1835_s0 = sld [smem:[#allocation22_spill]] }
  0x31   : > { %s276_s22 = sshll.u32 %s267_s16, 4  ;;  %p1040_p4 = pnand %p1047_p3, %p1479_p5  ;;  %s277_s22 = int_to_ptr.vmem [resolvable:$true] %s276_s22 }
  0x32   : > { %p1003_p6 = scmp.ge.s32.totalorder %s1348_s13, 1  ;;  %s264_s7 = scalar_lea.sflag [#allocation9], %s263_s6 }
  0x33   : > { %s1350_s18 = smov 512   ;;  %s1351_s29 = smov 128  }
  0x34   : > { %s1352_s11 = smov 8   ;;  %p300_p8 = scmp.lt.s32.totalorder %s1348_s13, 17 }
  0x36   : > { %s273_s14 = scalar_lea.hbm %s1835_s0, %s1002_s20  ;;  %p301_p9 = pnand %p1003_p6, %p300_p8 }
  0x37   : > { %s274_s19 = sshll.u32 %s273_s14, 4  ;;  %s306_s16 = sand.u32 (!%p301_p9), 1, %s1316_s28   ;;  %s275_s19 = int_to_ptr.hbm [resolvable:$true] %s274_s19 }
  0x38   : > { %1042 = dma.hbm_to_vmem [thread:$0]  (!%p1040_p4), %s275_s19, 512, %s277_s22, %s264_s7, %s1350_s18, %s1351_s29, %s1352_s11  }
  0x39   : > { %304 = sbr.rel (%p301_p9) target bundleno = 780 (0x30c), region = 40  ;;  %s1004_s15 = sshll.u32 (!%p301_p9), %s306_s16, 5 }
  0x3a   : > { %s307_s12 = scalar_lea.sflag (!%p301_p9), [#allocation9], %s306_s16  ;;  %s310_s3 = scalar_lea.vmem (!%p301_p9), [#allocation8], %s1004_s15 }
  0x3e   : > { %1291 = dma.done.wait (%p1490_p7), %s307_s12, 512  }
  0x3f   : > { %1293 = vsyncadd (%p1490_p7), %s307_s12, 4294966784  ;;  %s345_s29 = sand.u32 1, %s1304_s25   ;;  %p352_p5 = scmp.lt.s32.totalorder %s1328_s8, 1  ;;  %v1566_v0 = vld [vmem:[%s310_s3] sm:$0xff]  ;;  %v1568_v1 = vld [vmem:[%s310_s3 + $0x8] sm:$0xff] }
  0x40   : > { %s1005_s11 = sshll.u32 %s345_s29, 5  ;;  %p364_p10 = scmp.eq.s32.totalorder %s1328_s8, 0  ;;  %v1570_v2 = vld [vmem:[%s310_s3 + $0x10] sm:$0xff]  ;;  %v1578_v3 = vld [vmem:[%s310_s3 + $0x18] sm:$0xff] }
  0x41   : > { %p365_p11 = scmp.eq.s32.totalorder %s1324_s30, 0  ;;  %p368_p7 = scmp.eq.s32.totalorder %s1328_s8, 1 }
  0x42   : > { %s353_s18 = scalar_select %p352_p5, %s1328_s8, 1 }
  0x43   : > { %p1550_p12 = pnand %p365_p11, %p364_p10  ;;  %p369_p0 = scmp.eq.s32.totalorder %s1324_s30, 3 }
  0x44   : > { %s1021_s23 = sshll.u32 %s353_s18, 5  ;;  %s1837_s1 = sld [smem:[#allocation23_spill]] }
  0x45   : > { %s1838_s2 = sld [smem:[#allocation24_spill]]  ;;  %p367_p1 = pneg %p1550_p12 }
  0x46   : > { %p1574_p3 = pnand %p369_p0, %p368_p7  ;;  %p376_p4 = scmp.eq.s32.totalorder %s1332_s9, 0 }
  0x47   : > { %s1585_s7 = scalar_lea.vmem [#allocation11], %s1005_s11 }
  0x48   : > { %p371_p6 = pneg %p1574_p3  ;;  %p377_p8 = pnand %p376_p4, %p367_p1 }
  0x4a   : > { %s1559_s20 = scalar_lea.vmem %s1837_s1, %s1021_s23  ;;  %380 = sbr.rel (%p377_p8) target bundleno = 96 (0x60), region = 48 }
  0x4b   : > { %s1564_s14 = scalar_lea.vmem %s1838_s2, %s1021_s23 }
  0x4f   : > { %vm381_vm0 = vcmask 7168   ;;  %v1353_v4 = vmov 0.0  }
  0x50   : > { %382 = vst.msk [vmem:[#allocation2] sm:$0xff] %vm381_vm0, %v1353_v4 }
  0x51   : > { %383 = vst.msk [vmem:[#allocation2 + $0x8] sm:$0xff] %vm381_vm0, %v1353_v4 }
  0x52   : > { %384 = vst.msk [vmem:[#allocation2 + $0x10] sm:$0xff] %vm381_vm0, %v1353_v4 }
  0x53   : > { %385 = vst.msk [vmem:[#allocation2 + $0x18] sm:$0xff] %vm381_vm0, %v1353_v4 }
  0x54   : > { %386 = vst.msk [vmem:[#allocation3] sm:$0xff] %vm381_vm0, %v1353_v4 }
  0x55   : > { %387 = vst.msk [vmem:[#allocation3 + $0x8] sm:$0xff] %vm381_vm0, %v1353_v4 }
  0x56   : > { %388 = vst.msk [vmem:[#allocation3 + $0x10] sm:$0xff] %vm381_vm0, %v1353_v4 }
  0x57   : > { %389 = vst.msk [vmem:[#allocation3 + $0x18] sm:$0xff] %vm381_vm0, %v1353_v4 }
  0x58   : > { %390 = vst.msk [vmem:[#allocation4] sm:$0xff] %vm381_vm0, %v1353_v4 }
  0x59   : > { %391 = vst.msk [vmem:[#allocation4 + $0x8] sm:$0xff] %vm381_vm0, %v1353_v4 }
  0x5a   : > { %392 = vst.msk [vmem:[#allocation4 + $0x10] sm:$0xff] %vm381_vm0, %v1353_v4 }
  0x5b   : > { %393 = vst.msk [vmem:[#allocation4 + $0x18] sm:$0xff] %vm381_vm0, %v1353_v4 }
  0x5c   : > { %394 = vst.msk [vmem:[#allocation5] sm:$0xff] %vm381_vm0, %v1353_v4 }
  0x5d   : > { %395 = vst.msk [vmem:[#allocation5 + $0x8] sm:$0xff] %vm381_vm0, %v1353_v4 }
  0x5e   : > { %396 = vst.msk [vmem:[#allocation5 + $0x10] sm:$0xff] %vm381_vm0, %v1353_v4 }
  0x5f   : > { %397 = vst.msk [vmem:[#allocation5 + $0x18] sm:$0xff] %vm381_vm0, %v1353_v4 }
  0x60 PF: > { %p1010_p9 = scmp.ne.s32.totalorder %s1332_s9, 0 }
  0x62   : > { %400 = sbr.rel (%p1010_p9) target bundleno = 239 (0xef), region = 52 }
  0x67   : > { %409 = vadd.xlane.f32.xlu1 %v1570_v2  ;;  %405 = vadd.xlane.f32.xlu0 %v1566_v0  ;;  %v426_v5 = vmul.f32 %v1566_v0, %v1566_v0  ;;  %v427_v6 = vmul.f32 %v1568_v1, %v1568_v1  ;;  %v429_v7 = vmul.f32 %v1578_v3, %v1578_v3  ;;  %v403_v9 = vld [vmem:[#allocation2 + $0x10] sm:$0xff]  ;;  %v401_v10 = vld [vmem:[#allocation2] sm:$0xff]  ;;  %vm417_vm1 = vcmask 7168   ;;  %v404_v18 = vld [vmem:[#allocation2 + $0x18] sm:$0xff] }
  0x68   : > { %v428_v8 = vmul.f32 %v1570_v2, %v1570_v2  ;;  %v422_v13 = vld [vmem:[#allocation3] sm:$0xff]  ;;  %v402_v19 = vld [vmem:[#allocation2 + $0x8] sm:$0xff]  ;;  %v425_v27 = vld [vmem:[#allocation3 + $0x18] sm:$0xff] }
  0x69   : > { %430 = vadd.xlane.f32.xlu2 %v426_v5  ;;  %v423_v22 = vld [vmem:[#allocation3 + $0x8] sm:$0xff]  ;;  %v424_v28 = vld [vmem:[#allocation3 + $0x10] sm:$0xff] }
  0x6f   : > { %411 = vadd.xlane.f32.xlu1 %v1578_v3  ;;  %407 = vadd.xlane.f32.xlu0 %v1568_v1 }
  0x71   : > { %432 = vadd.xlane.f32.xlu2 %v427_v6 }
  0x77   : > { %436 = vadd.xlane.f32.xlu1 %v429_v7  ;;  %434 = vadd.xlane.f32.xlu0 %v428_v8 }
  0xda   : > { %v410_v11 = vpop.xlane.xlu1 %409  ;;  %v406_v12 = vpop.xlane.xlu0 %405 }
  0xdb   : > { %v415_v14 = vadd.f32 %v410_v11, %v403_v9  ;;  %v413_v15 = vadd.f32 %v406_v12, %v401_v10 }
  0xdc   : > { %v431_v16 = vpop.xlane.xlu2 %430 }
  0xdd   : > { %420 = vst.msk [vmem:[#allocation2 + $0x10] sm:$0xff] %vm417_vm1, %v415_v14  ;;  %v438_v17 = vadd.f32 %v431_v16, %v422_v13 }
  0xde   : > { %418 = vst.msk [vmem:[#allocation2] sm:$0xff] %vm417_vm1, %v413_v15 }
  0xdf   : > { %442 = vst.msk [vmem:[#allocation3] sm:$0xff] %vm417_vm1, %v438_v17 }
  0xe2   : > { %v412_v20 = vpop.xlane.xlu1 %411  ;;  %v408_v21 = vpop.xlane.xlu0 %407 }
  0xe3   : > { %v416_v23 = vadd.f32 %v412_v20, %v404_v18  ;;  %v414_v24 = vadd.f32 %v408_v21, %v402_v19 }
  0xe4   : > { %v433_v25 = vpop.xlane.xlu2 %432 }
  0xe5   : > { %421 = vst.msk [vmem:[#allocation2 + $0x18] sm:$0xff] %vm417_vm1, %v416_v23  ;;  %v439_v26 = vadd.f32 %v433_v25, %v423_v22 }
  0xe6   : > { %419 = vst.msk [vmem:[#allocation2 + $0x8] sm:$0xff] %vm417_vm1, %v414_v24 }
  0xe7   : > { %443 = vst.msk [vmem:[#allocation3 + $0x8] sm:$0xff] %vm417_vm1, %v439_v26 }
  0xea   : > { %v437_v29 = vpop.xlane.xlu1 %436  ;;  %v435_v30 = vpop.xlane.xlu0 %434 }
  0xeb   : > { %v441_v31 = vadd.f32 %v437_v29, %v425_v27  ;;  %v440_v32 = vadd.f32 %v435_v30, %v424_v28 }
  0xed   : > { %445 = vst.msk [vmem:[#allocation3 + $0x18] sm:$0xff] %vm417_vm1, %v441_v31 }
  0xee   : > { %444 = vst.msk [vmem:[#allocation3 + $0x10] sm:$0xff] %vm417_vm1, %v440_v32 }
  0xef PF: > { %p446_p5 = pnand %p376_p4, %p371_p6 }
  0xf1   : > { %449 = sbr.rel (%p446_p5) target bundleno = 277 (0x115), region = 56 }
  0xf6   : > { %v450_v33 = vld [vmem:[#allocation2] sm:$0xff]  ;;  %vm474_vm2 = vcmask 7168   ;;  %v451_v35 = vld [vmem:[#allocation2 + $0x8] sm:$0xff]  ;;  %v452_v40 = vld [vmem:[#allocation2 + $0x10] sm:$0xff] }
  0xf7   : > { %v458_v34 = vld [vmem:[#allocation3] sm:$0xff]  ;;  %v454_v36 = vmul.f32 0.0009765625, %v450_v33  ;;  %v455_v38 = vmul.f32 0.0009765625, %v451_v35  ;;  %v459_v39 = vld [vmem:[#allocation3 + $0x8] sm:$0xff]  ;;  %v460_v41 = vld [vmem:[#allocation3 + $0x10] sm:$0xff]  ;;  %v456_v43 = vmul.f32 0.0009765625, %v452_v40 }
  0xf8   : > { %v462_v37 = vmul.f32 0.0009765625, %v458_v34  ;;  %v463_v42 = vmul.f32 0.0009765625, %v459_v39  ;;  %v464_v44 = vmul.f32 0.0009765625, %v460_v41  ;;  %v453_v45 = vld [vmem:[#allocation2 + $0x18] sm:$0xff] }
  0xf9   : > { %v461_v46 = vld [vmem:[#allocation3 + $0x18] sm:$0xff]  ;;  %v466_v47 = vmul.f32 %v454_v36, %v454_v36  ;;  %475 = vst.msk [vmem:[#allocation6] sm:$0xff] %vm474_vm2, %v454_v36  ;;  %v467_v48 = vmul.f32 %v455_v38, %v455_v38  ;;  %v457_v49 = vmul.f32 0.0009765625, %v453_v45  ;;  %v468_v51 = vmul.f32 %v456_v43, %v456_v43 }
  0xfa   : > { %v465_v50 = vmul.f32 0.0009765625, %v461_v46  ;;  %476 = vst.msk [vmem:[#allocation6 + $0x8] sm:$0xff] %vm474_vm2, %v455_v38 }
  0xfb   : > { %v470_v52 = vsub.f32 %v462_v37, %v466_v47  ;;  %v471_v53 = vsub.f32 %v463_v42, %v467_v48  ;;  %477 = vst.msk [vmem:[#allocation6 + $0x10] sm:$0xff] %vm474_vm2, %v456_v43  ;;  %v469_v54 = vmul.f32 %v457_v49, %v457_v49  ;;  %v472_v55 = vsub.f32 %v464_v44, %v468_v51 }
  0xfc   : > { %478 = vst.msk [vmem:[#allocation6 + $0x18] sm:$0xff] %vm474_vm2, %v457_v49 }
  0xfd   : > { %v479_v56 = vadd.f32 1e-05, %v470_v52  ;;  %v480_v57 = vadd.f32 1e-05, %v471_v53  ;;  %v473_v58 = vsub.f32 %v465_v50, %v469_v54  ;;  %v481_v59 = vadd.f32 1e-05, %v472_v55 }
  0xff   : > { %1161 = vrsqrt.f32 %v479_v56  ;;  %v482_v60 = vadd.f32 1e-05, %v473_v58  ;;  %vm489_vm3 = vweird.f32 %v479_v56  ;;  %vm499_vm5 = vweird.f32 %v480_v57 }
 0x100   : > { %1163 = vrsqrt.f32 %v480_v57  ;;  %vm509_vm7 = vweird.f32 %v481_v59 }
 0x101   : > { %1165 = vrsqrt.f32 %v481_v59  ;;  %vm519_vm10 = vweird.f32 %v482_v60 }
 0x102   : > { %1167 = vrsqrt.f32 %v482_v60 }
 0x105   : > { %v1162_v61 = vpop.eup %1161 }
 0x106   : > { %v1164_v62 = vpop.eup %1163  ;;  %v484_v63 = vmul.f32 %v1162_v61, %v479_v56  ;;  %vm490_vm4 = vweird.f32 %v1162_v61 }
 0x107   : > { %v1166_v4 = vpop.eup %1165  ;;  %v494_v5 = vmul.f32 %v1164_v62, %v480_v57  ;;  %vm500_vm6 = vweird.f32 %v1164_v62  ;;  %vm491_vm9 = vmor %vm489_vm3, %vm490_vm4 }
 0x108   : > { %v1168_v6 = vpop.eup %1167  ;;  %v485_v7 = vmul.f32 %v1162_v61, %v484_v63  ;;  %v504_v8 = vmul.f32 %v1166_v4, %v481_v59  ;;  %vm510_vm8 = vweird.f32 %v1166_v4  ;;  %vm501_vm12 = vmor %vm499_vm5, %vm500_vm6 }
 0x109   : > { %v495_v9 = vmul.f32 %v1164_v62, %v494_v5  ;;  %v514_v10 = vmul.f32 %v1168_v6, %v482_v60  ;;  %vm520_vm11 = vweird.f32 %v1168_v6  ;;  %vm511_vm13 = vmor %vm509_vm7, %vm510_vm8 }
 0x10a   : > { %v486_v11 = vmul.f32 0.5, %v485_v7  ;;  %v505_v12 = vmul.f32 %v1166_v4, %v504_v8  ;;  %vm521_vm14 = vmor %vm519_vm10, %vm520_vm11 }
 0x10b   : > { %v496_v13 = vmul.f32 0.5, %v495_v9  ;;  %v515_v14 = vmul.f32 %v1168_v6, %v514_v10 }
 0x10c   : > { %v487_v15 = vsub.f32 1.5, %v486_v11  ;;  %v506_v16 = vmul.f32 0.5, %v505_v12 }
 0x10d   : > { %v497_v17 = vsub.f32 1.5, %v496_v13  ;;  %v516_v18 = vmul.f32 0.5, %v515_v14 }
 0x10e   : > { %v488_v19 = vmul.f32 %v1162_v61, %v487_v15  ;;  %v507_v20 = vsub.f32 1.5, %v506_v16 }
 0x10f   : > { %v498_v21 = vmul.f32 %v1164_v62, %v497_v17  ;;  %v517_v22 = vsub.f32 1.5, %v516_v18 }
 0x110   : > { %v492_v23 = vsel %vm491_vm9, %v1162_v61, %v488_v19  ;;  %v508_v24 = vmul.f32 %v1166_v4, %v507_v20 }
 0x111   : > { %523 = vst.msk [vmem:[#allocation7] sm:$0xff] %vm474_vm2, %v492_v23  ;;  %v502_v25 = vsel %vm501_vm12, %v1164_v62, %v498_v21  ;;  %v518_v26 = vmul.f32 %v1168_v6, %v517_v22 }
 0x112   : > { %524 = vst.msk [vmem:[#allocation7 + $0x8] sm:$0xff] %vm474_vm2, %v502_v25  ;;  %v512_v27 = vsel %vm511_vm13, %v1166_v4, %v508_v24 }
 0x113   : > { %525 = vst.msk [vmem:[#allocation7 + $0x10] sm:$0xff] %vm474_vm2, %v512_v27  ;;  %v522_v28 = vsel %vm521_vm14, %v1168_v6, %v518_v26 }
 0x114   : > { %526 = vst.msk [vmem:[#allocation7 + $0x18] sm:$0xff] %vm474_vm2, %v522_v28 }
 0x115 PF: > { %p527_p10 = scmp.eq.s32.totalorder %s1332_s9, 1  ;;  %p1011_p11 = scmp.ne.s32.totalorder %s1332_s9, 1 }
 0x116   : > { %s1840_s12 = sld [smem:[#allocation26_spill]] (!%p1011_p11) }
 0x117   : > { %530 = sbr.rel (%p1011_p11) target bundleno = 719 (0x2cf), region = 60  ;;  %s1842_s27 = sld [smem:[#allocation25_spill]] (!%p1011_p11) }
 0x11c   : > { %v561_v29 = vld [vmem:[#allocation7 + $0x10] sm:$0xff]  ;;  %v562_v30 = vld [vmem:[#allocation7 + $0x18] sm:$0xff]  ;;  %v1354_v32 = vmov 0   ;;  %v532_v35 = vld [vmem:[#allocation6 + $0x8] sm:$0xff]  ;;  %s1841_s3 = smov %s1840_s12  ;;  %vm675_vm15 = vcmask 261120   ;;  %vm737_vm0 = vcmask 7168  }
 0x11d   : > { %v534_v31 = vld [vmem:[#allocation6 + $0x18] sm:$0xff]  ;;  %1171 = vset.pattern.permute.xlu2 %v1354_v32  ;;  %1170 = vset.pattern.permute.xlu1 %v1354_v32  ;;  %v533_v34 = vld [vmem:[#allocation6 + $0x10] sm:$0xff]  ;;  %v560_v37 = vld [vmem:[#allocation7 + $0x8] sm:$0xff] }
 0x11e   : > { %1169 = vset.pattern.permute.xlu0 %v1354_v32  ;;  %575 = vperm.xlu2 %1171, %v561_v29   ;;  %v590_v33 = vld [vmem:[%s1559_s20 + $0x18] sm:$0xff]  ;;  %v589_v36 = vld [vmem:[%s1559_s20 + $0x10] sm:$0xff]  ;;  %v531_v38 = vld [vmem:[#allocation6] sm:$0xff] }
 0x11f   : > { %580 = vperm.xlu1 %1170, %v562_v30   ;;  %552 = vperm.xlu0 %1169, %v534_v31   ;;  %v588_v39 = vld [vmem:[%s1559_s20 + $0x8] sm:$0xff]  ;;  %v559_v40 = vld [vmem:[#allocation7] sm:$0xff]  ;;  %v618_v41 = vld [vmem:[%s1564_s14 + $0x18] sm:$0xff] }
 0x120   : > { %v616_v42 = vld [vmem:[%s1564_s14 + $0x8] sm:$0xff]  ;;  %v587_v43 = vld [vmem:[%s1559_s20] sm:$0xff]  ;;  %v617_v44 = vld [vmem:[%s1564_s14 + $0x10] sm:$0xff] }
 0x121   : > { %v652_v45 = vld [vmem:[%s1840_s12 + $0x8] sm:$0xff]  ;;  %v651_v46 = vld [vmem:[%s1841_s3] sm:$0xff]  ;;  %v654_v48 = vld [vmem:[%s1841_s3 + $0x18] sm:$0xff] }
 0x122   : > { %v615_v47 = vld [vmem:[%s1564_s14] sm:$0xff]  ;;  %v653_v49 = vld [vmem:[%s1841_s3 + $0x10] sm:$0xff]  ;;  %s1843_s14 = smov %s1842_s27 }
 0x123   : > { %v648_v23 = vld [vmem:[%s1843_s14 + $0x8] sm:$0xff]  ;;  %v649_v24 = vld [vmem:[%s1843_s14 + $0x10] sm:$0xff]  ;;  %v650_v25 = vld [vmem:[%s1843_s14 + $0x18] sm:$0xff] }
 0x126   : > { %608 = vperm.xlu2 %1171, %v590_v33  }
 0x127   : > { %547 = vperm.xlu0 %1169, %v533_v34   ;;  %542 = vperm.xlu1 %1170, %v532_v35  }
 0x12e   : > { %603 = vperm.xlu2 %1171, %v589_v36  }
 0x12f   : > { %570 = vperm.xlu1 %1170, %v560_v37   ;;  %537 = vperm.xlu0 %1169, %v531_v38  }
 0x136   : > { %598 = vperm.xlu2 %1171, %v588_v39  }
 0x137   : > { %565 = vperm.xlu1 %1170, %v559_v40   ;;  %636 = vperm.xlu0 %1169, %v618_v41  }
 0x13e   : > { %626 = vperm.xlu2 %1171, %v616_v42   ;;  %v721_v42 = vld [vmem:[#allocation4] sm:$0xff] }
 0x13f   : > { %593 = vperm.xlu1 %1170, %v587_v43   ;;  %631 = vperm.xlu0 %1169, %v617_v44   ;;  %v722_v43 = vld [vmem:[#allocation4 + $0x8] sm:$0xff] }
 0x146   : > { %662 = vperm.xlu2 %1171, %v652_v45  }
 0x147   : > { %657 = vperm.xlu1 %1170, %v651_v46   ;;  %621 = vperm.xlu0 %1169, %v615_v47  }
 0x14f   : > { %672 = vperm.xlu1 %1170, %v654_v48   ;;  %667 = vperm.xlu0 %1169, %v653_v49   ;;  %v723_v48 = vld [vmem:[#allocation4 + $0x10] sm:$0xff]  ;;  %v742_v49 = vld [vmem:[#allocation5] sm:$0xff] }
 0x178   : > { %v576_v50 = vpop.permute.xlu2 %575 }
 0x180   : > { %v609_v53 = vpop.permute.xlu2 %608 }
 0x188   : > { %v604_v56 = vpop.permute.xlu2 %603 }
 0x190   : > { %v599_v61 = vpop.permute.xlu2 %598 }
 0x191   : > { %v581_v51 = vpop.permute.xlu1 %580  ;;  %v553_v52 = vpop.permute.xlu0 %552 }
 0x192   : > { %v558_v57 = vsub.f32 %v1578_v3, %v553_v52 }
 0x194   : > { %v586_v60 = vmul.f32 %v581_v51, %v558_v57  ;;  %v744_v57 = vld [vmem:[#allocation5 + $0x10] sm:$0xff] }
 0x196   : > { %v614_v4 = vmul.f32 %v609_v53, %v586_v60 }
 0x198   : > { %v627_v12 = vpop.permute.xlu2 %626 }
 0x199   : > { %v548_v54 = vpop.permute.xlu0 %547  ;;  %v543_v55 = vpop.permute.xlu1 %542 }
 0x19a   : > { %v557_v62 = vsub.f32 %v1570_v2, %v548_v54  ;;  %v556_v63 = vsub.f32 %v1568_v1, %v543_v55 }
 0x19c   : > { %v585_v9 = vmul.f32 %v576_v50, %v557_v62  ;;  %v743_v50 = vld [vmem:[#allocation5 + $0x8] sm:$0xff] }
 0x19e   : > { %v613_v3 = vmul.f32 %v604_v56, %v585_v9 }
 0x1a0   : > { %v663_v27 = vpop.permute.xlu2 %662 }
 0x1a1   : > { %v571_v58 = vpop.permute.xlu1 %570  ;;  %v538_v59 = vpop.permute.xlu0 %537 }
 0x1a2   : > { %v584_v6 = vmul.f32 %v571_v58, %v556_v63  ;;  %v555_v2 = vsub.f32 %v1566_v0, %v538_v59  ;;  %v647_v0 = vld [vmem:[%s1842_s27] sm:$0xff]  ;;  %v724_v58 = vld [vmem:[#allocation4 + $0x18] sm:$0xff] }
 0x1a3   : > { %v745_v63 = vld [vmem:[#allocation5 + $0x18] sm:$0xff] }
 0x1a4   : > { %v612_v11 = vmul.f32 %v599_v61, %v584_v6 }
 0x1a6   : > { %v640_v14 = vadd.f32 %v627_v12, %v612_v11 }
 0x1a8   : > { %v644_v17 = vmax.f32 %v640_v14, 0.0 }
 0x1a9   : > { %v637_v5 = vpop.permute.xlu0 %636  ;;  %v566_v8 = vpop.permute.xlu1 %565 }
 0x1aa   : > { %v642_v7 = vadd.f32 %v637_v5, %v614_v4  ;;  %v583_v18 = vmul.f32 %v566_v8, %v555_v2 }
 0x1ac   : > { %v646_v10 = vmax.f32 %v642_v7, 0.0 }
 0x1ae   : > { %700 = vmatpush.msra.mxu0 %v646_v10  ;;  %1023 = vmatpush.msra.mxu1 %v646_v10 }
 0x1af   : > { %1024 = vmatpush.msra.mxu2 %v646_v10  ;;  %1025 = vmatpush.msra.mxu3 %v646_v10 }
 0x1b1   : > { %v632_v13 = vpop.permute.xlu0 %631  ;;  %v594_v16 = vpop.permute.xlu1 %593 }
 0x1b2   : > { %v641_v15 = vadd.f32 %v632_v13, %v613_v3  ;;  %v611_v19 = vmul.f32 %v594_v16, %v583_v18 }
 0x1b4   : > { %v645_v1 = vmax.f32 %v641_v15, 0.0 }
 0x1b6   : > { %701 = vmatpush.msra.mxu0 %v645_v1  ;;  %1026 = vmatpush.msra.mxu1 %v645_v1 }
 0x1b7   : > { %1027 = vmatpush.msra.mxu2 %v645_v1  ;;  %1028 = vmatpush.msra.mxu3 %v645_v1 }
 0x1b8   : > { %702 = vmatpush.msra.mxu0 %v644_v17  ;;  %1029 = vmatpush.msra.mxu1 %v644_v17 }
 0x1b9   : > { %1030 = vmatpush.msra.mxu2 %v644_v17  ;;  %1031 = vmatpush.msra.mxu3 %v644_v17  ;;  %v622_v20 = vpop.permute.xlu0 %621  ;;  %v658_v26 = vpop.permute.xlu1 %657 }
 0x1ba   : > { %v639_v21 = vadd.f32 %v622_v20, %v611_v19 }
 0x1bc   : > { %v643_v22 = vmax.f32 %v639_v21, 0.0 }
 0x1be   : > { %703 = vmatpush.msra.mxu0 %v643_v22  ;;  %1032 = vmatpush.msra.mxu1 %v643_v22 }
 0x1bf   : > { %1033 = vmatpush.msra.mxu2 %v643_v22  ;;  %1034 = vmatpush.msra.mxu3 %v643_v22 }
 0x1c0   : > { %1012 = vmatmul.msk.f32.vlgmr.msra.gmra.mxu0 %vm675_vm15, %v647_v0  ;;  %1013 = vmatmul.msk.f32.vlgmr.msra.gmra.mxu1 %vm675_vm15, %v648_v23 }
 0x1c1   : > { %1014 = vmatmul.msk.f32.vlgmr.msra.gmra.mxu2 %vm675_vm15, %v649_v24  ;;  %1015 = vmatmul.msk.f32.vlgmr.msra.gmra.mxu3 %vm675_vm15, %v650_v25  ;;  %v673_v32 = vpop.permute.xlu1 %672  ;;  %v668_v33 = vpop.permute.xlu0 %667 }
 0x23d   : > { %v705_v28 = vpop.f32.mrf.mxu0  ;;  %v708_v29 = vpop.f32.mrf.mxu1 }
 0x23e   : > { %v706_v30 = vadd.f32 %v705_v28, %v658_v26  ;;  %v709_v31 = vadd.f32 %v708_v29, %v663_v27 }
 0x240   : > { %717 = vst [vmem:[%s1585_s7] sm:$0xff] %v706_v30  ;;  %727 = vadd.xlane.f32.xlu0 %v709_v31  ;;  %725 = vadd.xlane.f32.xlu2 %v706_v30  ;;  %v747_v38 = vmul.f32 %v709_v31, %v709_v31  ;;  %v746_v39 = vmul.f32 %v706_v30, %v706_v30 }
 0x241   : > { %718 = vst [vmem:[%s1585_s7 + $0x8] sm:$0xff] %v709_v31 }
 0x244   : > { %v711_v34 = vpop.f32.mrf.mxu2  ;;  %v714_v35 = vpop.f32.mrf.mxu3 }
 0x245   : > { %v712_v36 = vadd.f32 %v711_v34, %v668_v33  ;;  %v715_v37 = vadd.f32 %v714_v35, %v673_v32 }
 0x247   : > { %719 = vst [vmem:[%s1585_s7 + $0x10] sm:$0xff] %v712_v36  ;;  %729 = vadd.xlane.f32.xlu1 %v712_v36  ;;  %v748_v40 = vmul.f32 %v712_v36, %v712_v36  ;;  %v749_v41 = vmul.f32 %v715_v37, %v715_v37 }
 0x248   : > { %720 = vst [vmem:[%s1585_s7 + $0x18] sm:$0xff] %v715_v37  ;;  %752 = vadd.xlane.f32.xlu0 %v747_v38  ;;  %750 = vadd.xlane.f32.xlu2 %v746_v39 }
 0x24f   : > { %754 = vadd.xlane.f32.xlu1 %v748_v40 }
 0x250   : > { %731 = vadd.xlane.f32.xlu2 %v715_v37 }
 0x258   : > { %756 = vadd.xlane.f32.xlu2 %v749_v41 }
 0x2b3   : > { %v726_v44 = vpop.xlane.xlu2 %725  ;;  %v728_v45 = vpop.xlane.xlu0 %727 }
 0x2b4   : > { %v733_v46 = vadd.f32 %v726_v44, %v721_v42  ;;  %v734_v47 = vadd.f32 %v728_v45, %v722_v43 }
 0x2b6   : > { %738 = vst.msk [vmem:[#allocation4] sm:$0xff] %vm737_vm0, %v733_v46 }
 0x2b7   : > { %739 = vst.msk [vmem:[#allocation4 + $0x8] sm:$0xff] %vm737_vm0, %v734_v47 }
 0x2ba   : > { %v730_v51 = vpop.xlane.xlu1 %729 }
 0x2bb   : > { %v735_v52 = vadd.f32 %v730_v51, %v723_v48  ;;  %v751_v53 = vpop.xlane.xlu2 %750  ;;  %v753_v54 = vpop.xlane.xlu0 %752 }
 0x2bc   : > { %v758_v55 = vadd.f32 %v751_v53, %v742_v49  ;;  %v759_v56 = vadd.f32 %v753_v54, %v743_v50 }
 0x2bd   : > { %740 = vst.msk [vmem:[#allocation4 + $0x10] sm:$0xff] %vm737_vm0, %v735_v52 }
 0x2be   : > { %762 = vst.msk [vmem:[#allocation5] sm:$0xff] %vm737_vm0, %v758_v55 }
 0x2bf   : > { %763 = vst.msk [vmem:[#allocation5 + $0x8] sm:$0xff] %vm737_vm0, %v759_v56 }
 0x2c2   : > { %v755_v59 = vpop.xlane.xlu1 %754 }
 0x2c3   : > { %v760_v60 = vadd.f32 %v755_v59, %v744_v57  ;;  %v732_v61 = vpop.xlane.xlu2 %731 }
 0x2c4   : > { %v736_v62 = vadd.f32 %v732_v61, %v724_v58 }
 0x2c5   : > { %764 = vst.msk [vmem:[#allocation5 + $0x10] sm:$0xff] %vm737_vm0, %v760_v60 }
 0x2c6   : > { %741 = vst.msk [vmem:[#allocation4 + $0x18] sm:$0xff] %vm737_vm0, %v736_v62 }
 0x2cb   : > { %v757_v4 = vpop.xlane.xlu2 %756 }
 0x2cc   : > { %v761_v5 = vadd.f32 %v757_v4, %v745_v63 }
 0x2ce   : > { %765 = vst.msk [vmem:[#allocation5 + $0x18] sm:$0xff] %vm737_vm0, %v761_v5 }
 0x2cf PF: > { %p766_p12 = pnand %p527_p10, %p371_p6 }
 0x2d0   : > { %s1844_s6 = sld [smem:[#allocation28_spill]] (!%p766_p12) }
 0x2d1   : > { %769 = sbr.rel (%p766_p12) target bundleno = 757 (0x2f5), region = 64  ;;  %s1845_s18 = sld [smem:[#allocation29_spill]] (!%p766_p12) }
 0x2d6   : > { %v770_v6 = vld [vmem:[#allocation4] sm:$0xff]  ;;  %vm794_vm1 = vcmask 7168   ;;  %v771_v8 = vld [vmem:[#allocation4 + $0x8] sm:$0xff]  ;;  %v772_v12 = vld [vmem:[#allocation4 + $0x10] sm:$0xff] }
 0x2d7   : > { %v778_v7 = vld [vmem:[#allocation5] sm:$0xff]  ;;  %v774_v9 = vmul.f32 0.0009765625, %v770_v6  ;;  %v775_v11 = vmul.f32 0.0009765625, %v771_v8  ;;  %v779_v3 = vld [vmem:[#allocation5 + $0x8] sm:$0xff]  ;;  %v780_v13 = vld [vmem:[#allocation5 + $0x10] sm:$0xff]  ;;  %v776_v15 = vmul.f32 0.0009765625, %v772_v12 }
 0x2d8   : > { %v782_v10 = vmul.f32 0.0009765625, %v778_v7  ;;  %v783_v14 = vmul.f32 0.0009765625, %v779_v3  ;;  %v784_v2 = vmul.f32 0.0009765625, %v780_v13  ;;  %v773_v1 = vld [vmem:[#allocation4 + $0x18] sm:$0xff] }
 0x2d9   : > { %v781_v16 = vld [vmem:[#allocation5 + $0x18] sm:$0xff]  ;;  %v786_v17 = vmul.f32 %v774_v9, %v774_v9  ;;  %795 = vst.msk [vmem:[%s1844_s6] sm:$0xff] %vm794_vm1, %v774_v9  ;;  %v787_v18 = vmul.f32 %v775_v11, %v775_v11  ;;  %v777_v19 = vmul.f32 0.0009765625, %v773_v1  ;;  %v788_v21 = vmul.f32 %v776_v15, %v776_v15 }
 0x2da   : > { %v785_v20 = vmul.f32 0.0009765625, %v781_v16  ;;  %796 = vst.msk [vmem:[%s1844_s6 + $0x8] sm:$0xff] %vm794_vm1, %v775_v11 }
 0x2db   : > { %v790_v22 = vsub.f32 %v782_v10, %v786_v17  ;;  %v791_v0 = vsub.f32 %v783_v14, %v787_v18  ;;  %797 = vst.msk [vmem:[%s1844_s6 + $0x10] sm:$0xff] %vm794_vm1, %v776_v15  ;;  %v789_v23 = vmul.f32 %v777_v19, %v777_v19  ;;  %v792_v24 = vsub.f32 %v784_v2, %v788_v21 }
 0x2dc   : > { %798 = vst.msk [vmem:[%s1844_s6 + $0x18] sm:$0xff] %vm794_vm1, %v777_v19 }
 0x2dd   : > { %v799_v25 = vadd.f32 1e-05, %v790_v22  ;;  %v800_v26 = vadd.f32 1e-05, %v791_v0  ;;  %v793_v27 = vsub.f32 %v785_v20, %v789_v23  ;;  %v801_v28 = vadd.f32 1e-05, %v792_v24 }
 0x2df   : > { %1172 = vrsqrt.f32 %v799_v25  ;;  %v802_v29 = vadd.f32 1e-05, %v793_v27  ;;  %vm809_vm2 = vweird.f32 %v799_v25  ;;  %vm819_vm4 = vweird.f32 %v800_v26 }
 0x2e0   : > { %1174 = vrsqrt.f32 %v800_v26  ;;  %vm829_vm6 = vweird.f32 %v801_v28 }
 0x2e1   : > { %1176 = vrsqrt.f32 %v801_v28  ;;  %vm839_vm9 = vweird.f32 %v802_v29 }
 0x2e2   : > { %1178 = vrsqrt.f32 %v802_v29 }
 0x2e5   : > { %v1173_v30 = vpop.eup %1172 }
 0x2e6   : > { %v1175_v31 = vpop.eup %1174  ;;  %v804_v32 = vmul.f32 %v1173_v30, %v799_v25  ;;  %vm810_vm3 = vweird.f32 %v1173_v30 }
 0x2e7   : > { %v1177_v33 = vpop.eup %1176  ;;  %v814_v34 = vmul.f32 %v1175_v31, %v800_v26  ;;  %vm820_vm5 = vweird.f32 %v1175_v31  ;;  %vm811_vm8 = vmor %vm809_vm2, %vm810_vm3 }
 0x2e8   : > { %v1179_v35 = vpop.eup %1178  ;;  %v805_v36 = vmul.f32 %v1173_v30, %v804_v32  ;;  %v824_v37 = vmul.f32 %v1177_v33, %v801_v28  ;;  %vm830_vm7 = vweird.f32 %v1177_v33  ;;  %vm821_vm11 = vmor %vm819_vm4, %vm820_vm5 }
 0x2e9   : > { %v815_v38 = vmul.f32 %v1175_v31, %v814_v34  ;;  %v834_v39 = vmul.f32 %v1179_v35, %v802_v29  ;;  %vm840_vm10 = vweird.f32 %v1179_v35  ;;  %vm831_vm12 = vmor %vm829_vm6, %vm830_vm7 }
 0x2ea   : > { %v806_v40 = vmul.f32 0.5, %v805_v36  ;;  %v825_v41 = vmul.f32 %v1177_v33, %v824_v37  ;;  %vm841_vm13 = vmor %vm839_vm9, %vm840_vm10 }
 0x2eb   : > { %v816_v42 = vmul.f32 0.5, %v815_v38  ;;  %v835_v43 = vmul.f32 %v1179_v35, %v834_v39 }
 0x2ec   : > { %v807_v44 = vsub.f32 1.5, %v806_v40  ;;  %v826_v45 = vmul.f32 0.5, %v825_v41 }
 0x2ed   : > { %v817_v46 = vsub.f32 1.5, %v816_v42  ;;  %v836_v47 = vmul.f32 0.5, %v835_v43 }
 0x2ee   : > { %v808_v48 = vmul.f32 %v1173_v30, %v807_v44  ;;  %v827_v49 = vsub.f32 1.5, %v826_v45 }
 0x2ef   : > { %v818_v50 = vmul.f32 %v1175_v31, %v817_v46  ;;  %v837_v51 = vsub.f32 1.5, %v836_v47 }
 0x2f0   : > { %v812_v52 = vsel %vm811_vm8, %v1173_v30, %v808_v48  ;;  %v828_v53 = vmul.f32 %v1177_v33, %v827_v49 }
 0x2f1   : > { %843 = vst.msk [vmem:[%s1845_s18] sm:$0xff] %vm794_vm1, %v812_v52  ;;  %v822_v54 = vsel %vm821_vm11, %v1175_v31, %v818_v50  ;;  %v838_v55 = vmul.f32 %v1179_v35, %v837_v51 }
 0x2f2   : > { %844 = vst.msk [vmem:[%s1845_s18 + $0x8] sm:$0xff] %vm794_vm1, %v822_v54  ;;  %v832_v56 = vsel %vm831_vm12, %v1177_v33, %v828_v53 }
 0x2f3   : > { %845 = vst.msk [vmem:[%s1845_s18 + $0x10] sm:$0xff] %vm794_vm1, %v832_v56  ;;  %v842_v57 = vsel %vm841_vm13, %v1179_v35, %v838_v55 }
 0x2f4   : > { %846 = vst.msk [vmem:[%s1845_s18 + $0x18] sm:$0xff] %vm794_vm1, %v842_v57 }
 0x2f5 PF: > { %s855_s27 = smul.u32 %s1328_s8, %s1332_s9  ;;  %s863_s15 = sshll.u32 %s1585_s7, 4  ;;  %s864_s15 = int_to_ptr.vmem [resolvable:$true] %s863_s15 }
 0x2f6   : > { %s856_s16 = smul.u32 %s1324_s30, %s1332_s9  ;;  %s1846_s5 = sld [smem:[#allocation27_spill]] }
 0x2f7   : > { %s1017_s12 = sshll.u32 %s855_s27, 4  ;;  %s848_s0 = scalar_lea.sflag [#allocation10], %s345_s29 }
 0x2f8   : > { %s860_s11 = sadd.s32 %s1017_s12, %s856_s16 }
 0x2f9   : > { %s1018_s21 = sshll.u32 %s860_s11, 3 }
 0x2fc   : > { %s862_s20 = scalar_lea.hbm %s1846_s5, %s1018_s21  ;;  %s1230_s9 = scalar_lea.hbm %s1846_s5, 256 }
 0x2fd   : > { %s865_s22 = sshll.u32 %s862_s20, 4  ;;  %s866_s22 = int_to_ptr.hbm [resolvable:$true] %s865_s22 }
 0x2fe   : > { %s1224_s1 = sshra.s32 %s866_s22, 4  ;;  %s1225_s1 = int_to_ptr.hbm [resolvable:$true] %s1224_s1 }
 0x2ff   : > { %s1226_s2 = scalar_lea.hbm %s1225_s1, 32  ;;  %p1231_p3 = scmp.lt.s32.totalorder %s1225_s1, %s1846_s5 }
 0x300   : > { %p1227_p7 = scmp.ne.s32.totalorder %s1225_s1, %s1226_s2  ;;  %p1232_p4 = scmp.lt.s32.totalorder %s1230_s9, %s1226_s2 }
 0x302   : > { %p1228_p0 = pnand %p1227_p7, %p1514_p13  ;;  %p1233_p6 = por %p1232_p4, %p1231_p3 }
 0x304   : > { %p1229_p1 = pneg %p1228_p0 }
 0x306   : > { %p1234_p8 = pnand %p1233_p6, %p1229_p1 }
 0x308   : > { %1237 = shalt.err (!%p1234_p8)
}
 0x309   : > { %s1355_s29 = smov 128   ;;  %s1356_s16 = smov 512  }
 0x30a   : > { %s1357_s12 = smov 8  }
 0x30b   : > { %1037 = dma.vmem_to_hbm [thread:$0]  (%p1514_p13), %s864_s15, 512, %s866_s22, %s848_s0, %s1355_s29, %s1356_s16, %s1357_s12  }
 0x30c PF: > { %p1048_p9 = scmp.ge.s32.totalorder %s1348_s13, 2  ;;  %s892_s11 = sand.u32 1, %s1300_s24  }
 0x30d   : > { %s893_s1 = scalar_lea.sflag [#allocation10], %s892_s11 }
 0x30e   : > { %p1044_p5 = pnand %p1048_p9, %p1520_p2 }
 0x310   : > { %p1045_p10 = pneg %p1044_p5 }
 0x312   : > { %1295 = dma.done.wait (%p1045_p10), %s893_s1, 512  }
 0x313   : > { %1297 = vsyncadd (%p1045_p10), %s893_s1, 4294966784  ;;  %s24_s13 = sadd.s32 1, %s1348_s13   ;;  %s1848_s0 = sld [smem:[#allocation21_spill]] }
 0x314   : > { %p1749_p11 = scmp.ge.s32.totalorder %s24_s13, 18   ;;  %s1849_s4 = sld [smem:[#allocation14_spill]] }
 0x315   : > { %s1850_s29 = sld [smem:[#allocation20_spill]]  ;;  %s1856_s24 = smov %s1304_s25 }
 0x316   : > { %s1851_s8 = sld [smem:[#allocation15_spill]]  ;;  %s1857_s25 = smov %s1308_s26 }
 0x317   : > { %s1852_s9 = sld [smem:[#allocation16_spill]]  ;;  %s1859_s27 = smov %s1316_s28 }
 0x318   : > { %s1853_s17 = sld [smem:[#allocation17_spill]]  ;;  %s1861_s30 = smov %s1336_s10 }
 0x319   : > { %s1854_s11 = sld [smem:[#allocation18_spill]]  ;;  %s1858_s26 = smov %s1848_s0 }
 0x31a   : > { %s1855_s12 = sld [smem:[#allocation19_spill]]  ;;  %s1860_s28 = smov %s1849_s4 }
 0x31b   :  { %23 = sbr.rel (!%p1749_p11) target bundleno = 19 (0x13), region = 127 }
 0x31e   : > { %s1862_s10 = smov %s1853_s17 }
 0x320   :  { %899 = vsyncpa [#allocation9], 1 }
 0x321   :  { %901 = vsyncpa [#allocation9 + $0x1], 1 }
 0x322   :  { %902 = vsyncpa [#allocation10], 1 }
 0x323   :  { %904 = vsyncpa [#allocation10 + $0x1], 1 }

</bundles_post_ra>
